<compile_context>
chip_gen: v5e
topology: v5e:2x2
jax: 0.10.0
libtpu: 0.0.40
codegen_flags: <defaults>
</compile_context>

<pallas_src>
import functools

import jax
import jax.numpy as jnp
from jax.experimental import pallas as pl
from jax.experimental.pallas import tpu as pltpu

LABEL_SMOOTH = 0.1
_MAX_TILE_BYTES = 4 << 20      # f32-equivalent budget for one similarity tile
_MAX_LANE_TILE = 8192          # lane-dim chunk (multiple of 128) for large N
_VMEM_LIMIT_BYTES = 48 << 20   # explicit scoped-VMEM limit (< 64 MiB v7x phys)


def _bce_partial_kernel(sim_ref, out_ref, *, total_rows, t_pos, t_neg):
    i = pl.program_id(0)          # row-block index
    j = pl.program_id(1)          # lane-block index

    x = sim_ref[...].astype(jnp.float32)     # (tb, nt); bf16 inputs upcast here
    tb, nt = x.shape
    x3 = x.reshape(tb // 8, 8, nt)            # layout-preserving sublane grouping

    # log-sigmoid identity (2 EUP ops/elem: exp + log1p):
    #   log p     = -softplus(-x)
    #   log (1-p) = -softplus(x) = -(softplus(-x) + x)
    # plus the PyTorch BCELoss clamp at -100.
    neg_x = -x3
    sp = jnp.maximum(neg_x, 0.0) + jnp.log1p(jnp.exp(-jnp.abs(neg_x)))  # softplus(-x)
    log_p = jnp.maximum(-sp, -100.0)
    log_1mp = jnp.maximum(-(sp + x3), -100.0)
    d = log_p - log_1mp

    # Label-smoothed target baked in as a per-lane weight (global column 0 is
    # the positive sample) — no resident target slab / extra input stream.
    cols = jax.lax.broadcasted_iota(jnp.int32, (8, nt), 1) + j * nt
    t = jnp.where(cols == 0, t_pos, t_neg)    # (8, nt), broadcasts over leading dim
    bce = -(log_1mp + t * d)

    # Per-block (8, nt) partial sums: pure VPU adds, no cross-lane/scalar work.
    # Only the boundary row block pays for the row mask.
    row_interior = (i + 1) * tb <= total_rows

    @pl.when(row_interior)
    def _():
        out_ref[...] = jnp.sum(bce, axis=0)

    @pl.when(jnp.logical_not(row_interior))
    def _():
        g = jax.lax.broadcasted_iota(jnp.int32, (tb // 8, 8, nt), 0)
        s = jax.lax.broadcasted_iota(jnp.int32, (tb // 8, 8, nt), 1)
        row_ok = (i * tb + g * 8 + s) < total_rows
        # selection (not multiplication) so undefined rows from the clamped
        # boundary-block DMA (possibly NaN/Inf) cannot leak into the sums
        out_ref[...] = jnp.sum(jnp.where(row_ok, bce, 0.0), axis=0)


def _pick_tiles(batch, n, itemsize, row_tile, lane_tile):
    # Lane tile: full N when it fits, else lane-dense multiple-of-128 chunks.
    if lane_tile is None:
        nt = min(n, _MAX_LANE_TILE)
    else:
        nt = min(int(lane_tile), n)
    if nt < n:
        nt = max(128, (nt // 128) * 128)

    # Row alignment: packed sub-32-bit dtypes tile sublanes in pairs/quads.
    ra = 8 * max(1, 4 // int(itemsize))
    b_al = pl.cdiv(batch, ra) * ra

    if row_tile is None:
        rt = max(ra, ((_MAX_TILE_BYTES // (nt * 4)) // ra) * ra)
        rt = min(rt, b_al)
        if rt >= b_al and b_al > ra:
            # Guarantee >= 2 row blocks so v7x megacore gets work on both TCs.
            rt = max(ra, pl.cdiv(b_al, 2 * ra) * ra)
    else:
        rt = max(ra, (min(int(row_tile), b_al) // ra) * ra)
    return rt, nt


def bce_loss(similarity, subsampling_weight=None, *, row_tile=None, lane_tile=None):
    """Sigmoid + label-smoothed BCE (mean).  Returns (loss, loss_record)."""
    del subsampling_weight  # unused: args.subsampling == False path (unweighted mean)
    B, N = similarity.shape
    assert N >= 2, "label smoothing needs at least 2 candidate columns"

    itemsize = jnp.dtype(similarity.dtype).itemsize
    rt, nt = _pick_tiles(B, N, itemsize, row_tile, lane_tile)
    n_row_blocks = pl.cdiv(B, rt)     # no wrapper pad: boundary block masked in-kernel
    n_lane_blocks = pl.cdiv(N, nt)

    kernel = functools.partial(
        _bce_partial_kernel,
        total_rows=B,
        t_pos=1.0 - LABEL_SMOOTH,
        t_neg=LABEL_SMOOTH / (N - 1),
    )

    partials = pl.pallas_call(
        kernel,
        out_shape=jax.ShapeDtypeStruct((n_row_blocks * 8, N), jnp.float32),
        grid_spec=pltpu.PrefetchScalarGridSpec(
            num_scalar_prefetch=0,
            grid=(n_row_blocks, n_lane_blocks),
            in_specs=[pl.BlockSpec((rt, nt), lambda i, j: (i, j))],
            out_specs=pl.BlockSpec((8, nt), lambda i, j: (i, j)),
        ),
        compiler_params=pltpu.CompilerParams(
            dimension_semantics=("parallel", "parallel"),
            vmem_limit_bytes=_VMEM_LIMIT_BYTES,
        ),
    )(similarity)

    loss = jnp.sum(partials) / jnp.float32(B * N)
    loss_record = {"hard_loss": loss}
    return loss, loss_record


def _reference(similarity):
    """PyTorch nn.Sigmoid + nn.BCELoss (label-smoothed targets, mean)."""
    B, N = similarity.shape
    col = jnp.arange(N)[None, :]
    target = jnp.where(col == 0, 1.0 - LABEL_SMOOTH, LABEL_SMOOTH / (N - 1))
    target = jnp.broadcast_to(target.astype(jnp.float32), (B, N))
    p = jax.nn.sigmoid(similarity.astype(jnp.float32))
    log_p = jnp.maximum(jnp.log(p), -100.0)
    log_1mp = jnp.maximum(jnp.log(1.0 - p), -100.0)
    return jnp.mean(-(target * log_p + (1.0 - target) * log_1mp))


if __name__ == "__main__":
    key = jax.random.PRNGKey(0)
    k1, k2 = jax.random.split(key)
    B, N = 24, 256  # (batch, num_candidates); column 0 = positive sample
    similarity = jax.random.normal(k1, (B, N), dtype=jnp.float32) * 3.0
    subsampling_weight = jax.random.uniform(k2, (B,), dtype=jnp.float32)

    ref = _reference(similarity)

    # Default auto-tiling: >= 2 row blocks, boundary-row mask exercised (24 % 16 != 0).
    loss, record = bce_loss(similarity, subsampling_weight)
    loss = jax.block_until_ready(loss)
    assert jnp.allclose(loss, ref, rtol=1e-4, atol=1e-4), (loss, ref)

    # Explicit 2-D (row x lane) tiling path with a boundary row block.
    loss2, _ = bce_loss(similarity, subsampling_weight, row_tile=16, lane_tile=128)
    loss2 = jax.block_until_ready(loss2)
    assert jnp.allclose(loss2, ref, rtol=1e-4, atol=1e-4), (loss2, ref)

    # bf16 similarity (caller-side half-bandwidth path); kernel upcasts to f32.
    sim_bf16 = similarity.astype(jnp.bfloat16)
    ref_bf16 = _reference(sim_bf16.astype(jnp.float32))
    loss3, _ = bce_loss(sim_bf16, subsampling_weight)
    loss3 = jax.block_until_ready(loss3)
    assert jnp.allclose(loss3, ref_bf16, rtol=1e-4, atol=1e-4), (loss3, ref_bf16)

    print("KERNEL_OK")
</pallas_src>

<mosaic_0001>
module attributes {stable_mosaic.version = 11 : i64} {
  func.func @_bce_partial_kernel(%arg0: i32, %arg1: i32, %arg2: memref<16x256xf32, #tpu.memory_space<vmem>>, %arg3: memref<8x256xf32, #tpu.memory_space<vmem>>) attributes {dimension_semantics = [#tpu.dimension_semantics<parallel>, #tpu.dimension_semantics<parallel>], iteration_bounds = array<i64: 2, 1>, scalar_prefetch = 0 : i64, scratch_operands = 0 : i64, tpu.core_type = #tpu.core_type<tc>, window_params = [{transform_indices = @transform_0, window_bounds = array<i64: 16, 256>}, {transform_indices = @transform_1, window_bounds = array<i64: 8, 256>}]} {
    %c0 = arith.constant 0 : index
    %c0_0 = arith.constant 0 : index
    %0 = vector.load %arg2[%c0, %c0_0] : memref<16x256xf32, #tpu.memory_space<vmem>>, vector<16x256xf32>
    %1 = vector.shape_cast %0 : vector<16x256xf32> to vector<2x8x256xf32>
    %cst = arith.constant 0.000000e+00 : f32
    %2 = vector.broadcast %cst : f32 to vector<2x8x256xf32>
    %3 = arith.subf %2, %1 : vector<2x8x256xf32>
    %cst_1 = arith.constant 0.000000e+00 : f32
    %4 = vector.broadcast %cst_1 : f32 to vector<2x8x256xf32>
    %5 = arith.maximumf %3, %4 : vector<2x8x256xf32>
    %6 = math.absf %3 : vector<2x8x256xf32>
    %cst_2 = arith.constant 0.000000e+00 : f32
    %7 = vector.broadcast %cst_2 : f32 to vector<2x8x256xf32>
    %8 = arith.subf %7, %6 : vector<2x8x256xf32>
    %9 = math.exp %8 : vector<2x8x256xf32>
    %10 = math.log1p %9 : vector<2x8x256xf32>
    %11 = arith.addf %5, %10 : vector<2x8x256xf32>
    %cst_3 = arith.constant 0.000000e+00 : f32
    %12 = vector.broadcast %cst_3 : f32 to vector<2x8x256xf32>
    %13 = arith.subf %12, %11 : vector<2x8x256xf32>
    %cst_4 = arith.constant -1.000000e+02 : f32
    %14 = vector.broadcast %cst_4 : f32 to vector<2x8x256xf32>
    %15 = arith.maximumf %13, %14 : vector<2x8x256xf32>
    %16 = arith.addf %11, %1 : vector<2x8x256xf32>
    %cst_5 = arith.constant 0.000000e+00 : f32
    %17 = vector.broadcast %cst_5 : f32 to vector<2x8x256xf32>
    %18 = arith.subf %17, %16 : vector<2x8x256xf32>
    %cst_6 = arith.constant -1.000000e+02 : f32
    %19 = vector.broadcast %cst_6 : f32 to vector<2x8x256xf32>
    %20 = arith.maximumf %18, %19 : vector<2x8x256xf32>
    %21 = arith.subf %15, %20 : vector<2x8x256xf32>
    %22 = tpu.iota {dimensions = array<i32: 1>} : vector<8x256xi32>
    %c256_i32 = arith.constant 256 : i32
    %23 = arith.muli %arg1, %c256_i32 : i32
    %24 = vector.broadcast %23 : i32 to vector<8x256xi32>
    %25 = arith.addi %22, %24 : vector<8x256xi32>
    %c0_i32 = arith.constant 0 : i32
    %26 = vector.broadcast %c0_i32 : i32 to vector<8x256xi32>
    %27 = arith.cmpi eq, %25, %26 : vector<8x256xi32>
    %cst_7 = arith.constant 0.899999976 : f32
    %cst_8 = arith.constant 3.92156857E-4 : f32
    %28 = vector.broadcast %cst_7 : f32 to vector<8x256xf32>
    %29 = vector.broadcast %cst_8 : f32 to vector<8x256xf32>
    %30 = arith.select %27, %28, %29 : vector<8x256xi1>, vector<8x256xf32>
    %31 = vector.shape_cast %30 : vector<8x256xf32> to vector<1x8x256xf32>
    %32 = vector.broadcast %31 : vector<1x8x256xf32> to vector<2x8x256xf32>
    %33 = arith.mulf %32, %21 : vector<2x8x256xf32>
    %34 = arith.addf %20, %33 : vector<2x8x256xf32>
    %cst_9 = arith.constant 0.000000e+00 : f32
    %35 = vector.broadcast %cst_9 : f32 to vector<2x8x256xf32>
    %36 = arith.subf %35, %34 : vector<2x8x256xf32>
    %c1_i32 = arith.constant 1 : i32
    %37 = arith.addi %arg0, %c1_i32 : i32
    %c16_i32 = arith.constant 16 : i32
    %38 = arith.muli %37, %c16_i32 : i32
    %c24_i32 = arith.constant 24 : i32
    %39 = arith.cmpi sle, %38, %c24_i32 : i32
    %40 = arith.extui %39 : i1 to i32
    %c0_i32_10 = arith.constant 0 : i32
    %41 = arith.cmpi ne, %40, %c0_i32_10 : i32
    scf.if %41 {
      %cst_12 = arith.constant dense<0.000000e+00> : vector<8x256xf32>
      %45 = vector.multi_reduction <add>, %36, %cst_12 [0] : vector<2x8x256xf32> to vector<8x256xf32>
      %c0_13 = arith.constant 0 : index
      %c0_14 = arith.constant 0 : index
      %46 = vector.load %arg3[%c0_13, %c0_14] : memref<8x256xf32, #tpu.memory_space<vmem>>, vector<8x256xf32>
      tpu.vector_store %arg3[%c0_13, %c0_14], %45 {strides = array<i32>} : memref<8x256xf32, #tpu.memory_space<vmem>>, vector<8x256xf32>,
    } else {
    }
    %true = arith.constant true
    %42 = arith.xori %39, %true : i1
    %43 = arith.extui %42 : i1 to i32
    %c0_i32_11 = arith.constant 0 : i32
    %44 = arith.cmpi ne, %43, %c0_i32_11 : i32
    scf.if %44 {
      %45 = tpu.iota {dimensions = array<i32: 0>} : vector<2x8x256xi32>
      %46 = tpu.iota {dimensions = array<i32: 1>} : vector<2x8x256xi32>
      %c16_i32_12 = arith.constant 16 : i32
      %47 = arith.muli %arg0, %c16_i32_12 : i32
      %c8_i32 = arith.constant 8 : i32
      %48 = vector.broadcast %c8_i32 : i32 to vector<2x8x256xi32>
      %49 = arith.muli %45, %48 : vector<2x8x256xi32>
      %50 = vector.broadcast %47 : i32 to vector<2x8x256xi32>
      %51 = arith.addi %50, %49 : vector<2x8x256xi32>
      %52 = arith.addi %51, %46 : vector<2x8x256xi32>
      %c24_i32_13 = arith.constant 24 : i32
      %53 = vector.broadcast %c24_i32_13 : i32 to vector<2x8x256xi32>
      %54 = arith.cmpi slt, %52, %53 : vector<2x8x256xi32>
      %cst_14 = arith.constant 0.000000e+00 : f32
      %55 = vector.broadcast %cst_14 : f32 to vector<2x8x256xf32>
      %56 = arith.select %54, %36, %55 : vector<2x8x256xi1>, vector<2x8x256xf32>
      %cst_15 = arith.constant dense<0.000000e+00> : vector<8x256xf32>
      %57 = vector.multi_reduction <add>, %56, %cst_15 [0] : vector<2x8x256xf32> to vector<8x256xf32>
      %c0_16 = arith.constant 0 : index
      %c0_17 = arith.constant 0 : index
      %58 = vector.load %arg3[%c0_16, %c0_17] : memref<8x256xf32, #tpu.memory_space<vmem>>, vector<8x256xf32>
      tpu.vector_store %arg3[%c0_16, %c0_17], %57 {strides = array<i32>} : memref<8x256xf32, #tpu.memory_space<vmem>>, vector<8x256xf32>,
    } else {
    }
    return
  }
  func.func @transform_0(%arg0: i32, %arg1: i32) -> (i32, i32) {
    %c0_i32 = arith.constant 0 : i32
    return %arg0, %arg1 : i32, i32
  }
  func.func @transform_1(%arg0: i32, %arg1: i32) -> (i32, i32) {
    %c0_i32 = arith.constant 0 : i32
    return %arg0, %arg1 : i32, i32
  }
}

</mosaic_0001>

<bundles_post_ra>
// kernel: tpu_custom_call.1
= control target key start
LH: loop header
LB: loop body
LE: loop exit
PB: predicated region body
PF: predicated region fallthrough
CT: control target
= control target key end

     0   :  { %6 = vsyncpa [#allocation3], 0  ;;  %s866_s0 = inlined_call_operand.hbm [shape: f32[24,256], index: 0, kind: input, shape index: {}]   ;;  %s867_s1 = inlined_call_operand.hbm [shape: f32[16,256], index: 1, kind: output, shape index: {}]  }
   0x1   :  { %8 = vsyncpa [#allocation3 + $0x1], 0 }
   0x2   :  { %9 = vsyncpa [#allocation4], 0 }
   0x3   :  { %11 = vsyncpa [#allocation4 + $0x1], 0  ;;  %s664_s6 = smov 0   ;;  %s666_s7 = smov 0  }
   0x4   :  { %s668_s8 = smov 0   ;;  %s670_s9 = smov 0  }
   0x5   :  { %s672_s10 = smov 0   ;;  %s674_s11 = smov 0  }
   0x6 LB: > { %s421_s12 = sadd.s32 4294967295, %s648_s11   ;;  %s422_s13 = sadd.s32 4294967294, %s648_s11   ;;  %s648_s11 = sphi %s674_s11, %s17_s11   ;;  %s644_s10 = sphi %s672_s10, %s880_s10   ;;  %s640_s9 = sphi %s670_s9, %s879_s9   ;;  %s636_s8 = sphi %s668_s8, %s878_s8   ;;  %s632_s7 = sphi %s666_s7, %s877_s7   ;;  %s628_s6 = sphi %s664_s6, %s876_s6  }
   0x7   : > { %s29_s14 = sadd.s32 1, %s644_s10  ;;  %s38_s15 = sadd.s32 1, %s636_s8 }
   0x8   : > { %p31_p0 = scmp.ge.s32.totalorder %s29_s14, 2  ;;  %p45_p1 = scmp.ne.s32.totalorder %s636_s8, %s632_s7 }
   0x9   : > { %p46_p2 = scmp.eq.s32.totalorder %s648_s11, 0  ;;  %p51_p3 = scmp.ne.s32.totalorder %s632_s7, %s628_s6 }
   0xa   : > { %s882_s14 = smov (%p31_p0, %s29_s14), 0  ;;  %p52_p5 = scmp.eq.s32.totalorder %s421_s12, 0 }
   0xb   : > { %p47_p4 = por %p46_p2, %p45_p1  ;;  %s33_s16 = ssub.s32 %s644_s10, %s882_s14 }
   0xc   : > { %p77_p6 = scmp.eq.s32.totalorder %s421_s12, 1  ;;  %p36_p7 = scmp.eq.s32.totalorder %s33_s16, 0 }
   0xd   : > { %p707_p8 = por %p52_p5, %p51_p3  ;;  %p83_p10 = scmp.eq.s32.totalorder %s422_s13, 1 }
   0xe   : > { %p711_p9 = por %p77_p6, %p45_p1  ;;  %p424_p12 = scmp.ge.s32.totalorder %s648_s11, 2 }
   0xf   : > { %s716_s19 = scalar_select %p36_p7, %s636_s8, %s38_s15  }
  0x10   : > { %p718_p11 = por %p83_p10, %p51_p3  ;;  %99 = sbr.rel (%p424_p12) target bundleno = 57 (0x39), region = 16 }
  0x15   : > { %102 = sbr.rel (!%p47_p4) target bundleno = 57 (0x39), region = 20  ;;  %s103_s21 = sand.u32 (%p47_p4), 1, %s636_s8  }
  0x16   : > { %s426_s22 = sshll.u32 (%p47_p4), %s644_s10, 1  ;;  %s425_s23 = sshll.u32 (%p47_p4), %s103_s21, 5 }
  0x17   : > { %s110_s24 = ssub.s32 (%p47_p4), 3, %s426_s22  ;;  %s730_s28 = scalar_lea.sflag (%p47_p4), [#allocation3], %s103_s21 }
  0x18   : > { %p111_p13 = scmp.lt.s32.totalorder (%p47_p4), %s110_s24, 2  ;;  %s107_s29 = scalar_lea.vmem (%p47_p4), [#allocation2], %s425_s23 }
  0x1a   : > { %s884_s24 = smov (!%p111_p13, %s110_s24), 2 }
  0x1b   : > { %s446_s25 = sshll.u32 %s884_s24, 4 }
  0x1c   : > { %s115_s26 = ssub.s32 32, %s446_s25 }
  0x1d   : > { %s116_s27 = sshll.u32 %s115_s26, 4 }
  0x1e   : > { %117 = vsyncadd %s730_s28, %s116_s27  ;;  %p733_p0 = scmp.ne.s32.totalorder %s446_s25, 0  ;;  %s448_s2 = sshll.u32 %s644_s10, 5 }
  0x1f   : > { %s122_s5 = scalar_lea.hbm %s866_s0, %s448_s2  ;;  %s741_s12 = sshll.u32 %s107_s29, 4  ;;  %s127_s12 = int_to_ptr.vmem [resolvable:$true] %s741_s12 }
  0x20   : > { %s124_s13 = sshll.u32 %s122_s5, 4  ;;  %s433_s15 = sshll.u32 %s884_s24, 8  ;;  %s744_s13 = int_to_ptr.hbm [resolvable:$true] %s124_s13 }
  0x21   : > { %s527_s16 = sshra.s32 %s744_s13, 4  ;;  %s529_s21 = sshrl.u32 %s433_s15, 4  ;;  %s528_s16 = int_to_ptr.hbm [resolvable:$true] %s527_s16 }
  0x22   : > { %s534_s22 = scalar_lea.hbm %s528_s16, %s529_s21  ;;  %s538_s26 = scalar_lea.hbm %s866_s0, 48 }
  0x23   : > { %p535_p1 = scmp.ne.s32.totalorder %s528_s16, %s534_s22  ;;  %p540_p4 = scmp.lt.s32.totalorder %s538_s26, %s534_s22 }
  0x25   : > { %p536_p2 = pnand %p535_p1, %p733_p0 }
  0x27   : > { %p537_p3 = pneg %p536_p2 }
  0x29   : > { %p542_p5 = pnand %p540_p4, %p537_p3 }
  0x2b   : > { %545 = shalt.err (!%p542_p5)
}
  0x2c   : > { %s546_s27 = sshra.s32 %s127_s12, 4  ;;  %s650_s2 = smov [#allocation2]   ;;  %s547_s27 = int_to_ptr.vmem [resolvable:$true] %s546_s27 }
  0x2d   : > { %s553_s29 = scalar_lea.vmem %s547_s27, %s529_s21  ;;  %s557_s3 = scalar_lea.vmem %s650_s2, 64 }
  0x2e   : > { %p554_p6 = scmp.ne.s32.totalorder %s547_s27, %s553_s29  ;;  %p559_p13 = scmp.lt.s32.totalorder %s557_s3, %s553_s29 }
  0x30   : > { %p555_p7 = pnand %p554_p6, %p733_p0 }
  0x32   : > { %p556_p10 = pneg %p555_p7 }
  0x34   : > { %p561_p1 = pnand %p559_p13, %p556_p10 }
  0x36   : > { %564 = shalt.err (!%p561_p1)
}
  0x37   : > { %s651_s4 = smov 256   ;;  %s652_s5 = smov 16  }
  0x38   : > { %132 = dma.hbm_to_vmem [thread:$0]  (%p733_p0), %s744_s13, %s433_s15, %s127_s12, %s730_s28, %s651_s4, %s651_s4, %s652_s5  }
  0x39 PF: > { %p434_p2 = scmp.ge.s32.totalorder %s648_s11, 1  ;;  %p134_p3 = scmp.lt.s32.totalorder %s648_s11, 3 }
  0x3b   : > { %p135_p4 = pnand %p434_p2, %p134_p3 }
  0x3c   : > { %s770_s16 = sand.u32 (!%p135_p4), 1, %s632_s7  }
  0x3d   : > { %138 = sbr.rel (%p135_p4) target bundleno = 149 (0x95), region = 24  ;;  %s435_s21 = sshll.u32 (!%p135_p4), %s770_s16, 5 }
  0x3e   : > { %s141_s22 = scalar_lea.sflag (!%p135_p4), [#allocation3], %s770_s16  ;;  %s144_s30 = scalar_lea.vmem (!%p135_p4), [#allocation2], %s435_s21 }
  0x42   : > { %619 = dma.done.wait (%p707_p8), %s141_s22, 512  }
  0x43   : > { %621 = vsyncadd (%p707_p8), %s141_s22, 4294966784  ;;  %s436_s24 = sshll.u32 %s770_s16, 4  ;;  %s780_s28 = sshll.u32 %s640_s9, 4  ;;  %v783_v0 = vld [vmem:[%s144_s30] sm:$0xff]  ;;  %v785_v1 = vld [vmem:[%s144_s30 + $0x8] sm:$0xff]  ;;  %v264_v40 = vlaneseq }
  0x44   : > { %s450_s12 = sadd.s32 16, %s780_s28  ;;  %v787_v2 = vld [vmem:[%s144_s30 + $0x10] sm:$0xff]  ;;  %v789_v3 = vld [vmem:[%s144_s30 + $0x18] sm:$0xff]  ;;  %v176_v4 = vsub.f32 0.0, %v783_v0  ;;  %v177_v5 = vsub.f32 0.0, %v785_v1  ;;  %s815_s9 = scalar_lea.vmem [#allocation5], %s436_s24 }
  0x45   : > { %v178_v6 = vsub.f32 0.0, %v787_v2  ;;  %v179_v7 = vsub.f32 0.0, %v789_v3  ;;  %v265_v57 = vand.u32 127, %v264_v40  ;;  %p438_p8 = scmp.gt.s32.totalorder %s450_s12, 24 }
  0x46   : > { %v184_v8 = vand.u32 2147483647, %v176_v4  ;;  %v185_v9 = vand.u32 2147483647, %v177_v5  ;;  %v180_v42 = vmax.f32 %v176_v4, 0.0  ;;  %v181_v47 = vmax.f32 %v177_v5, 0.0 }
  0x47   : > { %v186_v10 = vand.u32 2147483647, %v178_v6  ;;  %v187_v11 = vand.u32 2147483647, %v179_v7  ;;  %v182_v52 = vmax.f32 %v178_v6, 0.0  ;;  %v183_v59 = vmax.f32 %v179_v7, 0.0 }
  0x48   : > { %v188_v12 = vsub.f32 0.0, %v184_v8  ;;  %v189_v13 = vsub.f32 0.0, %v185_v9  ;;  %vm271_vm4 = vcmp.eq.s32.totalorder %v265_v57, 0 }
  0x49   : > { %v190_v14 = vsub.f32 0.0, %v186_v10  ;;  %v191_v15 = vsub.f32 0.0, %v187_v11 }
  0x4a   : > { %v192_v16 = vmul.f32 1.442695, %v188_v12  ;;  %v194_v17 = vmul.f32 1.442695, %v189_v13 }
  0x4b   : > { %v196_v18 = vmul.f32 1.442695, %v190_v14  ;;  %v198_v19 = vmul.f32 1.442695, %v191_v15 }
  0x4c   : > { %511 = vpow2.f32 %v192_v16 }
  0x4d   : > { %513 = vpow2.f32 %v194_v17 }
  0x4e   : > { %515 = vpow2.f32 %v196_v18 }
  0x4f   : > { %517 = vpow2.f32 %v198_v19 }
  0x52   : > { %v512_v20 = vpop.eup %511 }
  0x53   : > { %v514_v21 = vpop.eup %513  ;;  %v200_v22 = vadd.f32 1.0, %v512_v20  ;;  %v203_v23 = vmul.f32 -0.5, %v512_v20  ;;  %v206_v31 = vand.u32 2147483647, %v512_v20 }
  0x54   : > { %v516_v24 = vpop.eup %515  ;;  %v209_v25 = vadd.f32 1.0, %v514_v21  ;;  %v212_v26 = vmul.f32 -0.5, %v514_v21  ;;  %v215_v34 = vand.u32 2147483647, %v514_v21 }
  0x55   : > { %v518_v27 = vpop.eup %517  ;;  %519 = vlog2.f32 %v200_v22  ;;  %v218_v28 = vadd.f32 1.0, %v516_v24  ;;  %v204_v29 = vadd.f32 1.0, %v203_v23  ;;  %v221_v30 = vmul.f32 -0.5, %v516_v24 }
  0x56   : > { %521 = vlog2.f32 %v209_v25  ;;  %v213_v32 = vadd.f32 1.0, %v212_v26  ;;  %v227_v33 = vadd.f32 1.0, %v518_v27  ;;  %v230_v36 = vmul.f32 -0.5, %v518_v27 }
  0x57   : > { %523 = vlog2.f32 %v218_v28  ;;  %v222_v35 = vadd.f32 1.0, %v221_v30  ;;  %v224_v37 = vand.u32 2147483647, %v516_v24  ;;  %v205_v38 = vmul.f32 %v512_v20, %v204_v29 }
  0x58   : > { %525 = vlog2.f32 %v227_v33  ;;  %v231_v39 = vadd.f32 1.0, %v230_v36  ;;  %vm795_vm0 = vcmp.lt.f32.partialorder %v206_v31, 0.0004427343  ;;  %v214_v44 = vmul.f32 %v514_v21, %v213_v32 }
  0x59   : > { %v233_v45 = vand.u32 2147483647, %v518_v27  ;;  %vm799_vm1 = vcmp.lt.f32.partialorder %v215_v34, 0.0004427343  ;;  %v223_v50 = vmul.f32 %v516_v24, %v222_v35  ;;  %vm225_vm2 = vcmp.lt.f32.partialorder %v224_v37, 0.0004427343 }
  0x5a   : > { %v232_v56 = vmul.f32 %v518_v27, %v231_v39 }
  0x5b   : > { %v520_v41 = vpop.eup %519  ;;  %vm234_vm3 = vcmp.lt.f32.partialorder %v233_v45, 0.0004427343 }
  0x5c   : > { %v522_v46 = vpop.eup %521  ;;  %v202_v48 = vmul.f32 0.6931472, %v520_v41 }
  0x5d   : > { %v524_v51 = vpop.eup %523  ;;  %v211_v53 = vmul.f32 0.6931472, %v522_v46 }
  0x5e   : > { %v208_v54 = vsel %vm795_vm0, %v205_v38, %v202_v48  ;;  %v220_v55 = vmul.f32 0.6931472, %v524_v51  ;;  %v526_v58 = vpop.eup %525 }
  0x5f   : > { %v217_v60 = vsel %vm799_vm1, %v214_v44, %v211_v53  ;;  %v236_v61 = vadd.f32 %v208_v54, %v180_v42  ;;  %v229_v63 = vmul.f32 0.6931472, %v526_v58 }
  0x60   : > { %v226_v62 = vsel %vm225_vm2, %v223_v50, %v220_v55  ;;  %v237_v4 = vadd.f32 %v217_v60, %v181_v47 }
  0x61   : > { %v238_v5 = vadd.f32 %v226_v62, %v182_v52  ;;  %v240_v6 = vsub.f32 0.0, %v236_v61  ;;  %v248_v8 = vadd.f32 %v236_v61, %v783_v0  ;;  %v235_v9 = vsel %vm234_vm3, %v232_v56, %v229_v63 }
  0x62   : > { %v241_v10 = vsub.f32 0.0, %v237_v4  ;;  %v249_v11 = vadd.f32 %v237_v4, %v785_v1  ;;  %v239_v12 = vadd.f32 %v235_v9, %v183_v59  ;;  %v653_v1 = vmov 0.00039215686  }
  0x63   : > { %v242_v13 = vsub.f32 0.0, %v238_v5  ;;  %v250_v7 = vadd.f32 %v238_v5, %v787_v2  ;;  %v244_v14 = vmax.f32 %v240_v6, -100.0  ;;  %v252_v16 = vsub.f32 0.0, %v248_v8 }
  0x64   : > { %v245_v15 = vmax.f32 %v241_v10, -100.0  ;;  %v253_v17 = vsub.f32 0.0, %v249_v11  ;;  %v243_v18 = vsub.f32 0.0, %v239_v12  ;;  %v251_v20 = vadd.f32 %v239_v12, %v789_v3 }
  0x65   : > { %v246_v19 = vmax.f32 %v242_v13, -100.0  ;;  %v254_v21 = vsub.f32 0.0, %v250_v7  ;;  %v256_v22 = vmax.f32 %v252_v16, -100.0  ;;  %v273_v26 = vsel %vm271_vm4, 0.9, %v653_v1 }
  0x66   : > { %v257_v0 = vmax.f32 %v253_v17, -100.0  ;;  %v247_v23 = vmax.f32 %v243_v18, -100.0  ;;  %v255_v24 = vsub.f32 0.0, %v251_v20 }
  0x67   : > { %v258_v25 = vmax.f32 %v254_v21, -100.0  ;;  %v260_v27 = vsub.f32 %v244_v14, %v256_v22 }
  0x68   : > { %v261_v28 = vsub.f32 %v245_v15, %v257_v0  ;;  %v259_v2 = vmax.f32 %v255_v24, -100.0 }
  0x69   : > { %v262_v29 = vsub.f32 %v246_v19, %v258_v25  ;;  %v275_v30 = vmul.f32 %v273_v26, %v260_v27 }
  0x6a   : > { %v276_v31 = vmul.f32 0.00039215686, %v261_v28  ;;  %v263_v32 = vsub.f32 %v247_v23, %v259_v2 }
  0x6b   : > { %v277_v33 = vmul.f32 %v273_v26, %v262_v29  ;;  %v279_v34 = vadd.f32 %v275_v30, %v256_v22 }
  0x6c   : > { %v280_v3 = vadd.f32 %v276_v31, %v257_v0  ;;  %v278_v35 = vmul.f32 0.00039215686, %v263_v32  ;;  %292 = sbr.rel (%p438_p8) target bundleno = 117 (0x75), region = 32 }
  0x6d   : > { %v281_v36 = vadd.f32 %v277_v33, %v258_v25  ;;  %v283_v37 = vsub.f32 0.0, %v279_v34 }
  0x6e   : > { %v284_v38 = vsub.f32 0.0, %v280_v3  ;;  %v282_v39 = vadd.f32 %v278_v35, %v259_v2 }
  0x6f   : > { %v285_v41 = vsub.f32 0.0, %v281_v36 }
  0x70   : > { %v286_v42 = vsub.f32 0.0, %v282_v39 }
  0x71   : > { %v293_v43 = vadd.f32 %v285_v41, %v283_v37 }
  0x72   : > { %v294_v44 = vadd.f32 %v286_v42, %v284_v38 }
  0x73   : > { %295 = vst [vmem:[%s815_s9] sm:$0xff] %v293_v43 }
  0x74   : > { %296 = vst [vmem:[%s815_s9 + $0x8] sm:$0xff] %v294_v44 }
  0x75 PF: > { %p439_p0 = scmp.le.s32.totalorder %s450_s12, 24 }
  0x77   : > { %300 = sbr.rel (%p439_p0) target bundleno = 135 (0x87), region = 36 }
  0x7c   : > { %v302_v45 = vshrl.u32 %v264_v40, 7  ;;  %v304_v46 = vstv %s780_s28 }
  0x7d   : > { %v305_v47 = vadd.s32 8, %v304_v46 }
  0x7e   : > { %v306_v48 = vadd.s32 %v304_v46, %v302_v45 }
  0x7f   : > { %v307_v49 = vadd.s32 %v305_v47, %v302_v45 }
  0x80   : > { %vm308_vm5 = vcmp.lt.s32.totalorder %v306_v48, 24 }
  0x81   : > { %vm309_vm6 = vcmp.lt.s32.totalorder %v307_v49, 24  ;;  %v310_v50 = vsel %vm308_vm5, %v283_v37, 0.0  ;;  %v311_v51 = vsel %vm308_vm5, %v284_v38, 0.0 }
  0x82   : > { %v312_v52 = vsel %vm309_vm6, %v285_v41, 0.0  ;;  %v313_v53 = vsel %vm309_vm6, %v286_v42, 0.0 }
  0x83   : > { %v314_v54 = vadd.f32 %v312_v52, %v310_v50  ;;  %v315_v55 = vadd.f32 %v313_v53, %v311_v51 }
  0x85   : > { %316 = vst [vmem:[%s815_s9] sm:$0xff] %v314_v54 }
  0x86   : > { %317 = vst [vmem:[%s815_s9 + $0x8] sm:$0xff] %v315_v55 }
  0x87 PF: > { %s332_s15 = scalar_lea.hbm %s867_s1, %s780_s28  ;;  %s334_s23 = sshll.u32 %s815_s9, 4  ;;  %s335_s23 = int_to_ptr.vmem [resolvable:$true] %s334_s23 }
  0x88   : > { %s336_s25 = sshll.u32 %s332_s15, 4  ;;  %s319_s26 = scalar_lea.sflag [#allocation4], %s770_s16  ;;  %s337_s25 = int_to_ptr.hbm [resolvable:$true] %s336_s25 }
  0x89   : > { %s580_s27 = sshra.s32 %s337_s25, 4  ;;  %s586_s4 = scalar_lea.hbm %s867_s1, 32  ;;  %s581_s27 = int_to_ptr.hbm [resolvable:$true] %s580_s27 }
  0x8a   : > { %s582_s29 = scalar_lea.hbm %s581_s27, 16  ;;  %p587_p10 = scmp.lt.s32.totalorder %s581_s27, %s867_s1 }
  0x8b   : > { %p583_p5 = scmp.ne.s32.totalorder %s581_s27, %s582_s29  ;;  %p588_p13 = scmp.lt.s32.totalorder %s586_s4, %s582_s29 }
  0x8d   : > { %p584_p6 = pnand %p583_p5, %p711_p9  ;;  %p589_p1 = por %p588_p13, %p587_p10 }
  0x8f   : > { %p585_p7 = pneg %p584_p6 }
  0x91   : > { %p590_p2 = pnand %p589_p1, %p585_p7 }
  0x93   : > { %593 = shalt.err (!%p590_p2)
}
  0x94   : > { %453 = dma.vmem_to_hbm [thread:$0]  (%p711_p9), %s335_s23, 256, %s337_s25, %s319_s26  }
  0x95 PF: > { %s348_s16 = sand.u32 1, %s628_s6   ;;  %p456_p3 = pnand %p424_p12, %p718_p11 }
  0x96   : > { %s349_s22 = scalar_lea.sflag [#allocation4], %s348_s16 }
  0x97   : > { %p457_p4 = pneg %p456_p3 }
  0x99   : > { %623 = dma.done.wait (%p457_p4), %s349_s22, 256  }
  0x9a   : > { %625 = vsyncadd (%p457_p4), %s349_s22, 4294967040  ;;  %s17_s11 = sadd.s32 1, %s648_s11   ;;  %s876_s6 = smov %s632_s7 }
  0x9b   : > { %p14_p8 = scmp.ge.s32.totalorder %s17_s11, 4   ;;  %s877_s7 = smov %s636_s8 }
  0x9c   : > { %s878_s8 = smov %s716_s19  ;;  %s879_s9 = smov %s644_s10 }
  0x9d   : > { %s880_s10 = smov %s882_s14  ;;  %16 = sbr.rel (!%p14_p8) target bundleno = 6 (0x6), region = 77 }
  0xa2   :  { %355 = vsyncpa [#allocation3], 1 }
  0xa3   :  { %357 = vsyncpa [#allocation3 + $0x1], 1 }
  0xa4   :  { %358 = vsyncpa [#allocation4], 1 }
  0xa5   :  { %360 = vsyncpa [#allocation4 + $0x1], 1 }

</bundles_post_ra>
